<compile_context>
chip_gen: v7x
topology: tpu7x:2x2x1
jax: 0.10.0
libtpu: 0.0.40
codegen_flags: <defaults>
</compile_context>

<pallas_src>
import functools

import jax
import jax.numpy as jnp
from jax.experimental import pallas as pl
from jax.experimental.pallas import tpu as pltpu

LANES = 128                     # vreg lane dimension
TM_MAX = 4096                   # max tile rows per grid step (2 MiB f32/block)
SUB_ROWS = 64                   # rows per in-kernel sub-chunk (32 KiB f32)
VMEM_LIMIT = 32 * 1024 * 1024   # explicit scoped-VMEM budget (safe on v5e-v7x)


def _num_shards():
    """Use a 2-way 'parallel' shard axis only on chips with two TensorCores."""
    try:
        kind = jax.devices()[0].device_kind.lower()
    except Exception:
        return 1
    return 2 if "v7" in kind else 1


def _row_multiple(*dtypes):
    """Tile-row granularity required by the narrowest input dtype."""
    m = 8
    for dt in dtypes:
        bits = jnp.dtype(dt).itemsize * 8
        m = max(m, 8 * max(1, 32 // bits))   # f32 -> 8, bf16 -> 16, int8 -> 32
    return m


def _dice_partial_kernel(x_ref, t_ref, pt_ref, ps_ref, ts_ref, *,
                         rows, num_blocks, tiles_per_shard, tile_rows, sub,
                         has_partial, has_dup):
    """Accumulate per-shard partial sums of sigmoid(x)*t, sigmoid(x), t."""
    c = pl.program_id(0)    # shard axis ("parallel")
    i = pl.program_id(1)    # reduction axis ("arbitrary")
    block_idx = c * tiles_per_shard + i

    @pl.when(i == 0)
    def _init():
        pt_ref[...] = jnp.zeros_like(pt_ref)
        ps_ref[...] = jnp.zeros_like(ps_ref)
        ts_ref[...] = jnp.zeros_like(ts_ref)

    n_chunks = tile_rows // sub
    n_sub = sub // 8

    def chunk_sums(j, masked):
        """(8, 128) partial sums of one (sub, 128) slice of the tile."""
        r0 = pl.multiple_of(j * sub, sub)
        xc = x_ref[pl.ds(r0, sub), :].astype(jnp.float32)
        tc = t_ref[pl.ds(r0, sub), :].astype(jnp.float32)
        # Single-EUP sigmoid: 0.5 * tanh(0.5 * x) + 0.5 (no exp + divide).
        p = 0.5 * jnp.tanh(0.5 * xc) + 0.5
        if masked:
            # Mask rows past the real data BEFORE the product so that
            # sigmoid(garbage) (possibly NaN) never propagates.
            row0 = block_idx * tile_rows + r0
            row_ids = row0 + jax.lax.broadcasted_iota(
                jnp.int32, (sub, LANES), 0)
            valid = row_ids < rows
            p = jnp.where(valid, p, 0.0)
            tc = jnp.where(valid, tc, 0.0)
        pt = p * tc
        if n_sub == 1:
            return pt, p, tc
        # Fold onto (8, 128): the reshape splits the sublane axis on (8, 128)
        # vreg boundaries (layout-free); the sums are pure VPU adds.
        return (jnp.sum(pt.reshape(n_sub, 8, LANES), axis=0),
                jnp.sum(p.reshape(n_sub, 8, LANES), axis=0),
                jnp.sum(tc.reshape(n_sub, 8, LANES), axis=0))

    def accumulate(masked):
        if n_chunks == 1:
            pt_c, p_c, t_c = chunk_sums(0, masked)
        else:
            def body(j, carry):
                pt_a, p_a, t_a = carry
                dpt, dp, dt = chunk_sums(j, masked)
                return pt_a + dpt, p_a + dp, t_a + dt
            zero = jnp.zeros((8, LANES), jnp.float32)
            pt_c, p_c, t_c = jax.lax.fori_loop(
                0, n_chunks, body, (zero, zero, zero),
                unroll=min(4, n_chunks))
        pt_ref[...] += pt_c
        ps_ref[...] += p_c
        ts_ref[...] += t_c

    if not (has_partial or has_dup):
        # Every grid step is a full, valid block: no masking, no gating.
        accumulate(masked=False)
    else:
        last = num_blocks - 1
        fast_limit = last if has_partial else num_blocks

        @pl.when(block_idx < fast_limit)
        def _steady():
            accumulate(masked=False)

        if has_partial:
            @pl.when(block_idx == last)
            def _last():
                accumulate(masked=True)
        # block_idx > last: duplicated clamped shard step -> no compute at all.


def dice_loss(inputs, targets, smooth=1.0):
    """Pallas TPU implementation of DiceLoss.forward (logits in, loss out)."""
    if isinstance(inputs, dict):
        inputs = inputs["pred"]

    x = jnp.ravel(inputs)      # free reshape; keep native dtype
    t = jnp.ravel(targets)
    n = x.shape[0]

    mult = _row_multiple(x.dtype, t.dtype)
    rows = n // LANES
    use_kernel = rows >= mult
    if not use_kernel:
        rows = 0
    n_main = rows * LANES

    pt_sum = jnp.float32(0.0)   # sum(sigmoid(x) * t)
    p_sum = jnp.float32(0.0)    # sum(sigmoid(x))
    t_sum = jnp.float32(0.0)    # sum(t)

    if use_kernel:
        # TODO(synk): when n % 128 != 0 this slice+reshape cannot fuse into
        # the custom call, so XLA materializes an HBM copy of x/t; a manual
        # 1-D DMA path would avoid it.  The lane-aligned path is copy-free.
        x_main = x if n_main == n else x[:n_main]
        t_main = t if n_main == n else t[:n_main]
        x2 = x_main.reshape(rows, LANES)
        t2 = t_main.reshape(rows, LANES)

        # Tile rows: as large as possible, a multiple of the sub-chunk size
        # (itself a multiple of every dtype's sublane-packing granularity).
        tile_rows = min(TM_MAX, rows)
        if tile_rows >= SUB_ROWS:
            tile_rows = (tile_rows // SUB_ROWS) * SUB_ROWS
        else:
            tile_rows = (tile_rows // mult) * mult
        sub = min(SUB_ROWS, tile_rows)

        num_blocks = pl.cdiv(rows, tile_rows)
        nc = min(_num_shards(), num_blocks)
        tiles_per_shard = pl.cdiv(num_blocks, nc)
        has_partial = num_blocks * tile_rows != rows
        has_dup = nc * tiles_per_shard != num_blocks

        if has_dup:
            def in_map(c, i):
                # Duplicated shard steps re-read the last valid block; their
                # compute is skipped inside the kernel.
                return (jnp.minimum(c * tiles_per_shard + i, num_blocks - 1), 0)
        else:
            def in_map(c, i):
                return (c * tiles_per_shard + i, 0)

        def out_map(c, i):
            return (c, 0)   # resident accumulator block, one per shard

        kernel = functools.partial(
            _dice_partial_kernel, rows=rows, num_blocks=num_blocks,
            tiles_per_shard=tiles_per_shard, tile_rows=tile_rows, sub=sub,
            has_partial=has_partial, has_dup=has_dup)

        bytes_accessed = (x2.size * x2.dtype.itemsize
                          + t2.size * t2.dtype.itemsize
                          + 3 * nc * 8 * LANES * 4)
        cost = pl.CostEstimate(flops=6 * n_main, transcendentals=n_main,
                               bytes_accessed=bytes_accessed)

        pt_part, p_part, t_part = pl.pallas_call(
            kernel,
            out_shape=[jax.ShapeDtypeStruct((nc * 8, LANES), jnp.float32)] * 3,
            grid=(nc, tiles_per_shard),
            in_specs=[pl.BlockSpec((tile_rows, LANES), in_map),
                      pl.BlockSpec((tile_rows, LANES), in_map)],
            out_specs=[pl.BlockSpec((8, LANES), out_map)] * 3,
            compiler_params=pltpu.CompilerParams(
                dimension_semantics=("parallel", "arbitrary"),
                vmem_limit_bytes=VMEM_LIMIT),
            cost_estimate=cost,
        )(x2, t2)

        # Single cross-lane reduction, done once in plain JAX (tiny arrays).
        pt_sum = jnp.sum(pt_part)
        p_sum = jnp.sum(p_part)
        t_sum = jnp.sum(t_part)

    if n_main < n:
        # Sub-tile tail (or tiny inputs): negligible work, plain JAX.
        xt = x[n_main:].astype(jnp.float32)
        tt = t[n_main:].astype(jnp.float32)
        pt_tail = jax.nn.sigmoid(xt)
        pt_sum = pt_sum + jnp.sum(pt_tail * tt)
        p_sum = p_sum + jnp.sum(pt_tail)
        t_sum = t_sum + jnp.sum(tt)

    smooth = float(smooth)
    dice = (2.0 * pt_sum + smooth) / (p_sum + t_sum + smooth)
    return (jnp.float32(1.0) - dice).astype(jnp.float32)


def _reference_dice_loss(inputs, targets, smooth=1.0):
    p = jax.nn.sigmoid(jnp.ravel(inputs).astype(jnp.float32))
    t = jnp.ravel(targets).astype(jnp.float32)
    inter = jnp.sum(p * t)
    dice = (2.0 * inter + smooth) / (jnp.sum(p) + jnp.sum(t) + smooth)
    return 1.0 - dice


if __name__ == "__main__":
    key = jax.random.PRNGKey(0)
    k1, k2, k3, k4, k5, k6 = jax.random.split(key, 6)

    # Test 1: NCHW logits + binary float mask (lane-aligned element count).
    x = jax.random.normal(k1, (2, 4, 16, 16), dtype=jnp.float32)
    tgt = (jax.random.uniform(k2, (2, 4, 16, 16)) > 0.5).astype(jnp.float32)
    loss = jax.block_until_ready(dice_loss(x, tgt, smooth=1.0))
    ref = _reference_dice_loss(x, tgt, smooth=1.0)
    assert jnp.allclose(loss, ref, atol=1e-4, rtol=1e-4), (loss, ref)

    # Test 2: awkward size + bf16 logits (exercises partial-tile masking,
    # the masked-last-block path, native-dtype upcast and the JAX tail).
    x2 = jax.random.normal(k3, (2, 3, 29, 23), dtype=jnp.bfloat16)
    tgt2 = (jax.random.uniform(k4, (2, 3, 29, 23)) > 0.5).astype(jnp.float32)
    loss2 = jax.block_until_ready(dice_loss(x2, tgt2, smooth=1.0))
    ref2 = _reference_dice_loss(x2, tgt2, smooth=1.0)
    assert jnp.allclose(loss2, ref2, atol=1e-4, rtol=1e-4), (loss2, ref2)

    # Test 3: larger aligned tile exercising the multi-chunk fori_loop fold
    # and a narrow (bf16) target dtype fed natively to the kernel.
    x3 = jax.random.normal(k5, (2, 4, 96, 96), dtype=jnp.float32)
    tgt3 = (jax.random.uniform(k6, (2, 4, 96, 96)) > 0.5).astype(jnp.bfloat16)
    loss3 = jax.block_until_ready(dice_loss(x3, tgt3, smooth=1.0))
    ref3 = _reference_dice_loss(x3, tgt3, smooth=1.0)
    assert jnp.allclose(loss3, ref3, atol=1e-4, rtol=1e-4), (loss3, ref3)

    print("KERNEL_OK")
</pallas_src>

<mosaic_0001>
module attributes {stable_mosaic.version = 11 : i64} {
  func.func @_dice_partial_kernel(%arg0: i32, %arg1: i32, %arg2: memref<16x128xf32, #tpu.memory_space<vmem>>, %arg3: memref<16x128xf32, #tpu.memory_space<vmem>>, %arg4: memref<8x128xf32, #tpu.memory_space<vmem>>, %arg5: memref<8x128xf32, #tpu.memory_space<vmem>>, %arg6: memref<8x128xf32, #tpu.memory_space<vmem>>) attributes {dimension_semantics = [#tpu.dimension_semantics<parallel>, #tpu.dimension_semantics<arbitrary>], iteration_bounds = array<i64: 1, 1>, scalar_prefetch = 0 : i64, scratch_operands = 0 : i64, tpu.core_type = #tpu.core_type<tc>, window_params = [{transform_indices = @transform_0, window_bounds = array<i64: 16, 128>}, {transform_indices = @transform_1, window_bounds = array<i64: 16, 128>}, {transform_indices = @transform_2, window_bounds = array<i64: 8, 128>}, {transform_indices = @transform_3, window_bounds = array<i64: 8, 128>}, {transform_indices = @transform_4, window_bounds = array<i64: 8, 128>}]} {
    %c0_i32 = arith.constant 0 : i32
    %0 = arith.cmpi eq, %arg1, %c0_i32 : i32
    %1 = arith.extui %0 : i1 to i32
    %c0_i32_0 = arith.constant 0 : i32
    %2 = arith.cmpi ne, %1, %c0_i32_0 : i32
    scf.if %2 {
      %cst_20 = arith.constant 0.000000e+00 : f32
      %31 = vector.broadcast %cst_20 : f32 to vector<8x128xf32>
      %c0_21 = arith.constant 0 : index
      %c0_22 = arith.constant 0 : index
      %32 = vector.load %arg4[%c0_21, %c0_22] : memref<8x128xf32, #tpu.memory_space<vmem>>, vector<8x128xf32>
      tpu.vector_store %arg4[%c0_21, %c0_22], %31 {strides = array<i32>} : memref<8x128xf32, #tpu.memory_space<vmem>>, vector<8x128xf32>,
      %cst_23 = arith.constant 0.000000e+00 : f32
      %33 = vector.broadcast %cst_23 : f32 to vector<8x128xf32>
      %c0_24 = arith.constant 0 : index
      %c0_25 = arith.constant 0 : index
      %34 = vector.load %arg5[%c0_24, %c0_25] : memref<8x128xf32, #tpu.memory_space<vmem>>, vector<8x128xf32>
      tpu.vector_store %arg5[%c0_24, %c0_25], %33 {strides = array<i32>} : memref<8x128xf32, #tpu.memory_space<vmem>>, vector<8x128xf32>,
      %cst_26 = arith.constant 0.000000e+00 : f32
      %35 = vector.broadcast %cst_26 : f32 to vector<8x128xf32>
      %c0_27 = arith.constant 0 : index
      %c0_28 = arith.constant 0 : index
      %36 = vector.load %arg6[%c0_27, %c0_28] : memref<8x128xf32, #tpu.memory_space<vmem>>, vector<8x128xf32>
      tpu.vector_store %arg6[%c0_27, %c0_28], %35 {strides = array<i32>} : memref<8x128xf32, #tpu.memory_space<vmem>>, vector<8x128xf32>,
    } else {
    }
    %c0_i32_1 = arith.constant 0 : i32
    %3 = tpu.assume_multiple %c0_i32_1, 16 : i32
    %4 = arith.index_cast %3 : i32 to index
    %c0 = arith.constant 0 : index
    %5 = vector.load %arg2[%4, %c0] : memref<16x128xf32, #tpu.memory_space<vmem>>, vector<16x128xf32>
    %6 = arith.index_cast %3 : i32 to index
    %c0_2 = arith.constant 0 : index
    %7 = vector.load %arg3[%6, %c0_2] : memref<16x128xf32, #tpu.memory_space<vmem>>, vector<16x128xf32>
    %cst = arith.constant 5.000000e-01 : f32
    %8 = vector.broadcast %cst : f32 to vector<16x128xf32>
    %9 = arith.mulf %8, %5 : vector<16x128xf32>
    %10 = math.tanh %9 : vector<16x128xf32>
    %cst_3 = arith.constant 5.000000e-01 : f32
    %11 = vector.broadcast %cst_3 : f32 to vector<16x128xf32>
    %12 = arith.mulf %11, %10 : vector<16x128xf32>
    %cst_4 = arith.constant 5.000000e-01 : f32
    %13 = vector.broadcast %cst_4 : f32 to vector<16x128xf32>
    %14 = arith.addf %12, %13 : vector<16x128xf32>
    %15 = arith.mulf %14, %7 : vector<16x128xf32>
    %16 = vector.shape_cast %15 : vector<16x128xf32> to vector<2x8x128xf32>
    %cst_5 = arith.constant dense<0.000000e+00> : vector<8x128xf32>
    %17 = vector.multi_reduction <add>, %16, %cst_5 [0] : vector<2x8x128xf32> to vector<8x128xf32>
    %18 = vector.shape_cast %14 : vector<16x128xf32> to vector<2x8x128xf32>
    %cst_6 = arith.constant dense<0.000000e+00> : vector<8x128xf32>
    %19 = vector.multi_reduction <add>, %18, %cst_6 [0] : vector<2x8x128xf32> to vector<8x128xf32>
    %20 = vector.shape_cast %7 : vector<16x128xf32> to vector<2x8x128xf32>
    %cst_7 = arith.constant dense<0.000000e+00> : vector<8x128xf32>
    %21 = vector.multi_reduction <add>, %20, %cst_7 [0] : vector<2x8x128xf32> to vector<8x128xf32>
    %c0_8 = arith.constant 0 : index
    %c0_9 = arith.constant 0 : index
    %22 = vector.load %arg4[%c0_8, %c0_9] : memref<8x128xf32, #tpu.memory_space<vmem>>, vector<8x128xf32>
    %23 = arith.addf %22, %17 : vector<8x128xf32>
    %c0_10 = arith.constant 0 : index
    %c0_11 = arith.constant 0 : index
    %24 = vector.load %arg4[%c0_10, %c0_11] : memref<8x128xf32, #tpu.memory_space<vmem>>, vector<8x128xf32>
    tpu.vector_store %arg4[%c0_10, %c0_11], %23 {strides = array<i32>} : memref<8x128xf32, #tpu.memory_space<vmem>>, vector<8x128xf32>,
    %c0_12 = arith.constant 0 : index
    %c0_13 = arith.constant 0 : index
    %25 = vector.load %arg5[%c0_12, %c0_13] : memref<8x128xf32, #tpu.memory_space<vmem>>, vector<8x128xf32>
    %26 = arith.addf %25, %19 : vector<8x128xf32>
    %c0_14 = arith.constant 0 : index
    %c0_15 = arith.constant 0 : index
    %27 = vector.load %arg5[%c0_14, %c0_15] : memref<8x128xf32, #tpu.memory_space<vmem>>, vector<8x128xf32>
    tpu.vector_store %arg5[%c0_14, %c0_15], %26 {strides = array<i32>} : memref<8x128xf32, #tpu.memory_space<vmem>>, vector<8x128xf32>,
    %c0_16 = arith.constant 0 : index
    %c0_17 = arith.constant 0 : index
    %28 = vector.load %arg6[%c0_16, %c0_17] : memref<8x128xf32, #tpu.memory_space<vmem>>, vector<8x128xf32>
    %29 = arith.addf %28, %21 : vector<8x128xf32>
    %c0_18 = arith.constant 0 : index
    %c0_19 = arith.constant 0 : index
    %30 = vector.load %arg6[%c0_18, %c0_19] : memref<8x128xf32, #tpu.memory_space<vmem>>, vector<8x128xf32>
    tpu.vector_store %arg6[%c0_18, %c0_19], %29 {strides = array<i32>} : memref<8x128xf32, #tpu.memory_space<vmem>>, vector<8x128xf32>,
    return
  }
  func.func @transform_0(%arg0: i32, %arg1: i32) -> (i32, i32) {
    %c1_i32 = arith.constant 1 : i32
    %0 = arith.muli %arg0, %c1_i32 : i32
    %1 = arith.addi %0, %arg1 : i32
    %c0_i32 = arith.constant 0 : i32
    %c0_i32_0 = arith.constant 0 : i32
    return %1, %c0_i32 : i32, i32
  }
  func.func @transform_1(%arg0: i32, %arg1: i32) -> (i32, i32) {
    %c1_i32 = arith.constant 1 : i32
    %0 = arith.muli %arg0, %c1_i32 : i32
    %1 = arith.addi %0, %arg1 : i32
    %c0_i32 = arith.constant 0 : i32
    %c0_i32_0 = arith.constant 0 : i32
    return %1, %c0_i32 : i32, i32
  }
  func.func @transform_2(%arg0: i32, %arg1: i32) -> (i32, i32) {
    %c0_i32 = arith.constant 0 : i32
    %c0_i32_0 = arith.constant 0 : i32
    return %arg0, %c0_i32 : i32, i32
  }
  func.func @transform_3(%arg0: i32, %arg1: i32) -> (i32, i32) {
    %c0_i32 = arith.constant 0 : i32
    %c0_i32_0 = arith.constant 0 : i32
    return %arg0, %c0_i32 : i32, i32
  }
  func.func @transform_4(%arg0: i32, %arg1: i32) -> (i32, i32) {
    %c0_i32 = arith.constant 0 : i32
    %c0_i32_0 = arith.constant 0 : i32
    return %arg0, %c0_i32 : i32, i32
  }
}

</mosaic_0001>

<bundles_post_ra>
// kernel: tpu_custom_call.1
= control target key start
LH: loop header
LB: loop body
LE: loop exit
PB: predicated region body
PF: predicated region fallthrough
CT: control target
= control target key end

     0   :  { %10 = vsyncpa [#allocation3], 0  ;;  %s368_s0 = inlined_call_operand.hbm [shape: f32[16,128], index: 0, kind: input, shape index: {}]   ;;  %s369_s1 = inlined_call_operand.hbm [shape: f32[16,128], index: 1, kind: input, shape index: {}]   ;;  %s370_s2 = inlined_call_operand.hbm [shape: f32[8,128], index: 2, kind: output, shape index: {0}]   ;;  %s371_s3 = inlined_call_operand.hbm [shape: f32[8,128], index: 3, kind: output, shape index: {1}]   ;;  %s372_s4 = inlined_call_operand.hbm [shape: f32[8,128], index: 4, kind: output, shape index: {2}]  }
   0x1   :  { %11 = vsyncpa [#allocation6], 0 }
   0x2   :  { %12 = vsyncpa [#allocation4], 0 }
   0x3   :  { %13 = vsyncpa [#allocation9], 0  ;;  %s262_s15 = smov [#allocation2]   ;;  %s144_s19 = scalar_lea.hbm %s368_s0, 256 }
   0x4   :  { %s23_s16 = sshll.u32 %s262_s15, 4  ;;  %p145_p0 = scmp.ne.s32.totalorder %s368_s0, %s144_s19  ;;  %s24_s16 = int_to_ptr.vmem [resolvable:$true] %s23_s16 }
   0x5   :  { %p148_p1 = scmp.lt.u32.totalorder %s144_s19, %s368_s0 }
   0x7   :  { %p150_p2 = pnand %p148_p1, %p145_p0 }
   0x9   :  { %153 = shalt.err (!%p150_p2)
}
   0xa   :  { %s154_s24 = scalar_lea.vmem %s24_s16, 256  ;;  %p159_p4 = scmp.lt.s32.totalorder %s24_s16, %s24_s16 }
   0xb   :  { %p155_p3 = scmp.ne.s32.totalorder %s24_s16, %s154_s24  ;;  %p160_p5 = scmp.lt.s32.totalorder %s154_s24, %s154_s24 }
   0xd   :  { %p161_p6 = por %p160_p5, %p159_p4 }
   0xf   :  { %p162_p7 = pnand %p161_p6, %p155_p3 }
  0x11   :  { %165 = shalt.err (!%p162_p7)
}
  0x12   :  { %s263_s25 = smov 128   ;;  %s264_s26 = smov 8  }
  0x13   :  { %29 = dma.hbm_to_vmem [thread:$0]  %s368_s0, 256, %s24_s16, [#allocation3], %s263_s25, %s263_s25, %s264_s26  }
  0x14   :  { %s265_s29 = smov [#allocation5]   ;;  %s166_s7 = scalar_lea.hbm %s369_s1, 256 }
  0x15   :  { %s39_s30 = sshll.u32 %s265_s29, 4  ;;  %p167_p8 = scmp.ne.s32.totalorder %s369_s1, %s166_s7  ;;  %s40_s30 = int_to_ptr.vmem [resolvable:$true] %s39_s30 }
  0x16   :  { %p170_p9 = scmp.lt.u32.totalorder %s166_s7, %s369_s1 }
  0x18   :  { %p172_p10 = pnand %p170_p9, %p167_p8 }
  0x1a   :  { %175 = shalt.err (!%p172_p10)
}
  0x1b   :  { %s176_s12 = scalar_lea.vmem %s40_s30, 256  ;;  %p181_p12 = scmp.lt.s32.totalorder %s40_s30, %s40_s30 }
  0x1c   :  { %p177_p11 = scmp.ne.s32.totalorder %s40_s30, %s176_s12  ;;  %p182_p13 = scmp.lt.s32.totalorder %s176_s12, %s176_s12 }
  0x1e   :  { %p183_p0 = por %p182_p13, %p181_p12 }
  0x20   :  { %p184_p1 = pnand %p183_p0, %p177_p11 }
  0x22   :  { %187 = shalt.err (!%p184_p1)
}
  0x23   :  { %45 = dma.hbm_to_vmem [thread:$0]  %s369_s1, 256, %s40_s30, [#allocation6], %s263_s25, %s263_s25, %s264_s26  }
  0x24   :  { %254 = dma.done.wait [#allocation3], 256  }
  0x25   :  { %255 = vsyncadd [#allocation3], 4294967040 }
  0x26   :  { %256 = dma.done.wait [#allocation6], 256  }
  0x27   :  { %257 = vsyncadd [#allocation6], 4294967040  ;;  %v63_v0 = vld [vmem:[#allocation2] sm:$0xff]  ;;  %v64_v1 = vld [vmem:[#allocation2 + $0x8] sm:$0xff]  ;;  %s266_s1 = smov [#allocation8]   ;;  %s267_s15 = smov [#allocation10]  }
  0x28   :  { %v67_v2 = vmul.f32 0.5, %v63_v0  ;;  %v68_v3 = vmul.f32 0.5, %v64_v1  ;;  %v65_v4 = vld [vmem:[#allocation5] sm:$0xff]  ;;  %v66_v5 = vld [vmem:[#allocation5 + $0x8] sm:$0xff]  ;;  %s105_s14 = sshll.u32 %s266_s1, 4  ;;  %s115_s16 = sshll.u32 %s267_s15, 4  ;;  %s106_s14 = int_to_ptr.vmem [resolvable:$true] %s105_s14  ;;  %s318_s16 = int_to_ptr.vmem [resolvable:$true] %s115_s16 }
  0x29   :  { %v79_v6 = vadd.f32 %v66_v5, %v65_v4  ;;  %s268_s17 = smov [#allocation7]   ;;  %s188_s19 = scalar_lea.vmem %s106_s14, 128 }
  0x2a   :  { %140 = vtanh.f32 %v67_v2  ;;  %s95_s18 = sshll.u32 %s268_s17, 4  ;;  %p189_p2 = scmp.ne.s32.totalorder %s106_s14, %s188_s19  ;;  %s320_s18 = int_to_ptr.vmem [resolvable:$true] %s95_s18 }
  0x2b   :  { %142 = vtanh.f32 %v68_v3  ;;  %88 = vst [vmem:[#allocation10] sm:$0xff] %v79_v6  ;;  %p193_p3 = scmp.lt.s32.totalorder %s106_s14, %s106_s14  ;;  %p194_p4 = scmp.lt.s32.totalorder %s188_s19, %s188_s19 }
  0x2d   :  { %p195_p5 = por %p194_p4, %p193_p3 }
  0x2f   :  { %p196_p6 = pnand %p195_p5, %p189_p2 }
  0x34   :  { %v141_v7 = vpop.eup %140 }
  0x35   :  { %v143_v8 = vpop.eup %142  ;;  %v71_v9 = vmul.f32 0.5, %v141_v7 }
  0x36   :  { %v72_v10 = vmul.f32 0.5, %v143_v8 }
  0x37   :  { %v73_v11 = vadd.f32 0.5, %v71_v9 }
  0x38   :  { %v74_v12 = vadd.f32 0.5, %v72_v10 }
  0x39   :  { %v75_v13 = vmul.f32 %v73_v11, %v65_v4 }
  0x3a   :  { %v78_v14 = vadd.f32 %v74_v12, %v73_v11  ;;  %v76_v15 = vmul.f32 %v74_v12, %v66_v5 }
  0x3c   :  { %v77_v16 = vadd.f32 %v76_v15, %v75_v13  ;;  %85 = vst [vmem:[#allocation8] sm:$0xff] %v78_v14 }
  0x3d   :  { %199 = shalt.err (!%p196_p6)
}
  0x3e   :  { %s200_s22 = scalar_lea.hbm %s371_s3, 128 }
  0x3f   :  { %p201_p7 = scmp.ne.s32.totalorder %s371_s3, %s200_s22  ;;  %p204_p8 = scmp.lt.u32.totalorder %s200_s22, %s371_s3 }
  0x41   :  { %p206_p9 = pnand %p204_p8, %p201_p7 }
  0x43   :  { %209 = shalt.err (!%p206_p9)
}
  0x44   :  { %108 = dma.vmem_to_hbm [thread:$0]  %s106_s14, 128, %s371_s3, [#allocation9]   ;;  %82 = vst [vmem:[#allocation7] sm:$0xff] %v77_v16 }
  0x45   :  { %s210_s29 = scalar_lea.vmem %s318_s16, 128  ;;  %p215_p11 = scmp.lt.s32.totalorder %s318_s16, %s318_s16 }
  0x46   :  { %p211_p10 = scmp.ne.s32.totalorder %s318_s16, %s210_s29  ;;  %p216_p12 = scmp.lt.s32.totalorder %s210_s29, %s210_s29 }
  0x48   :  { %p217_p13 = por %p216_p12, %p215_p11 }
  0x4a   :  { %p218_p0 = pnand %p217_p13, %p211_p10 }
  0x4c   :  { %221 = shalt.err (!%p218_p0)
}
  0x4d   :  { %s222_s6 = scalar_lea.hbm %s372_s4, 128 }
  0x4e   :  { %p223_p1 = scmp.ne.s32.totalorder %s372_s4, %s222_s6  ;;  %p226_p2 = scmp.lt.u32.totalorder %s222_s6, %s372_s4 }
  0x50   :  { %p228_p3 = pnand %p226_p2, %p223_p1 }
  0x52   :  { %231 = shalt.err (!%p228_p3)
}
  0x53   :  { %118 = dma.vmem_to_hbm [thread:$0]  %s318_s16, 128, %s372_s4, [#allocation9]  }
  0x54   :  { %s232_s12 = scalar_lea.vmem %s320_s18, 128  ;;  %p237_p5 = scmp.lt.s32.totalorder %s320_s18, %s320_s18 }
  0x55   :  { %p233_p4 = scmp.ne.s32.totalorder %s320_s18, %s232_s12  ;;  %p238_p6 = scmp.lt.s32.totalorder %s232_s12, %s232_s12 }
  0x57   :  { %p239_p7 = por %p238_p6, %p237_p5 }
  0x59   :  { %p240_p8 = pnand %p239_p7, %p233_p4 }
  0x5b   :  { %243 = shalt.err (!%p240_p8)
}
  0x5c   :  { %s244_s1 = scalar_lea.hbm %s370_s2, 128 }
  0x5d   :  { %p245_p9 = scmp.ne.s32.totalorder %s370_s2, %s244_s1  ;;  %p248_p10 = scmp.lt.u32.totalorder %s244_s1, %s370_s2 }
  0x5f   :  { %p250_p11 = pnand %p248_p10, %p245_p9 }
  0x61   :  { %253 = shalt.err (!%p250_p11)
}
  0x62   :  { %98 = dma.vmem_to_hbm [thread:$0]  %s320_s18, 128, %s370_s2, [#allocation4]  }
  0x63   :  { %258 = dma.done.wait [#allocation4], 128  }
  0x64   :  { %259 = vsyncadd [#allocation4], 4294967168 }
  0x65   :  { %260 = dma.done.wait [#allocation9], 256  }
  0x66   :  { %261 = vsyncadd [#allocation9], 4294967040 }
  0x67   :  { %128 = vsyncpa [#allocation3], 1 }
  0x68   :  { %129 = vsyncpa [#allocation6], 1 }
  0x69   :  { %130 = vsyncpa [#allocation4], 1 }
  0x6a   :  { %131 = vsyncpa [#allocation9], 1 }

</bundles_post_ra>
